<compile_context>
chip_gen: v5e
topology: v5e:2x2
jax: 0.10.0
libtpu: 0.0.40
codegen_flags: <defaults>
</compile_context>

<pallas_src>
import functools

import jax
import jax.numpy as jnp
from jax.experimental import pallas as pl
from jax.experimental.pallas import tpu as pltpu

EPS = 1e-16
_TARGET_BLOCK_BYTES = 2 * 1024 * 1024  # ~2 MiB/input block: DMA time >> 0.35 us step overhead


def _round_up(x, m):
    return (x + m - 1) // m * m


def _vmem_config():
    """Return (tile-sizing budget, vmem_limit_bytes) per TPU generation."""
    cap = 128 * 1024 * 1024
    try:
        cap = int(getattr(pltpu.get_tpu_info(), "vmem_capacity_bytes", cap))
    except Exception:
        pass  # no TPU info at trace time -> conservative default
    if cap <= 64 * 1024 * 1024:                      # v7x-class: 64 MiB per TC
        return 20 * 1024 * 1024, 48 * 1024 * 1024
    return 48 * 1024 * 1024, 96 * 1024 * 1024        # v5e / v6e: 128 MiB physical


def _choose_tiles(rows, hw, itemsize, target_bytes):
    """Pick (tile_m, tile_n) for a (rows, hw) matrix with padded-(8,128) accounting.

    Prefers full-width (tile_n == hw) blocks (single contiguous HBM segments).
    tile_m is a multiple of 8 (or the full extent), tile_n a multiple of 128
    (or the full extent)."""
    pr = _round_up(rows, 8)
    pn = _round_up(hw, 128)
    if pr * pn * itemsize <= target_bytes:           # whole matrix in one block
        return rows, hw
    if 8 * pn * itemsize <= target_bytes:            # full-width stripes
        tile_m = (target_bytes // (pn * itemsize)) // 8 * 8
        tile_m = rows if tile_m >= rows else max(8, min(tile_m, rows - rows % 8))
        return tile_m, hw
    # Even an 8-row full-width stripe is too big: tile the lane axis too.
    tile_m = rows if rows <= 8 else 8
    cand = (target_bytes // (_round_up(tile_m, 8) * itemsize)) // 128 * 128
    tile_n = hw if cand >= hw else max(128, cand)
    return tile_m, tile_n


def _choose_lane_tile(hw, c, itemsize, target_bytes):
    """Lane tile for the reduction='none' path ((C, tile_n) blocks)."""
    if hw <= 128:
        return hw
    pc = _round_up(c, 8)
    if pc * _round_up(hw, 128) * itemsize <= target_bytes:
        return hw
    cand = (target_bytes // (pc * itemsize)) // 128 * 128
    return hw if cand >= hw else max(128, cand)


def _kl_partial_kernel(prob_ref, target_ref, weight_ref, out_ref, *,
                       rows, hw, tile_m, tile_n, need_row_mask, need_lane_mask):
    """Weighted-KL partial sum of one (tile_m, tile_n) block of the (B*C, HW) view."""
    p = prob_ref[...].astype(jnp.float32)
    t = target_ref[...].astype(jnp.float32)
    w = weight_ref[...].astype(jnp.float32)                    # (tile_m, 1) per-row weight
    # log((p+eps)/(t+eps)) as a log difference: 2 EUP logs, no multi-op f32 divide.
    kl = w * (-t * (jnp.log(p + EPS) - jnp.log(t + EPS)))

    if not (need_row_mask or need_lane_mask):
        out_ref[...] = jnp.sum(kl).reshape(1, 1, 1, 1)
        return

    r = pl.program_id(0)
    n = pl.program_id(1)
    edge_conds = []
    if need_row_mask:
        edge_conds.append(r == pl.num_programs(0) - 1)
    if need_lane_mask:
        edge_conds.append(n == pl.num_programs(1) - 1)
    edge = functools.reduce(jnp.logical_or, edge_conds)

    @pl.when(jnp.logical_not(edge))
    def _():                                                    # interior tile: no mask cost
        out_ref[...] = jnp.sum(kl).reshape(1, 1, 1, 1)

    @pl.when(edge)
    def _():                                                    # boundary tile: zero OOB entries
        valid = None
        if need_row_mask:
            rid = r * tile_m + jax.lax.broadcasted_iota(jnp.int32, kl.shape, 0)
            valid = rid < rows
        if need_lane_mask:
            cid = n * tile_n + jax.lax.broadcasted_iota(jnp.int32, kl.shape, 1)
            cm = cid < hw
            valid = cm if valid is None else jnp.logical_and(valid, cm)
        # jnp.where is a select: NaN/Inf from garbage padding rows/lanes cannot leak.
        out_ref[...] = jnp.sum(jnp.where(valid, kl, 0.0)).reshape(1, 1, 1, 1)


def _kl_none_kernel(prob_ref, target_ref, weight_ref, out_ref):
    """reduction='none': per-position channel-reduced weighted KL for one lane tile."""
    p = prob_ref[...].astype(jnp.float32)                       # (C, tile_n)
    t = target_ref[...].astype(jnp.float32)
    w = weight_ref[...].astype(jnp.float32)                     # (C, 1)
    kl = w * (-t * (jnp.log(p + EPS) - jnp.log(t + EPS)))
    # Out-of-range lanes of a partial last tile are cropped on writeback and valid
    # lanes only depend on valid inputs (channel-axis reduce), so no mask is needed.
    out_ref[...] = jnp.sum(kl, axis=0, keepdims=True)[None]     # (1, 1, tile_n)


def kl_div(prob, target, weight=None, reduction="mean", block_bytes=None):
    """Pallas implementation of KL_div.forward (eps=1e-16).

    prob, target: (B, C, *spatial), simplex along axis 1.
    weight: optional length-C vector (normalized to sum 1, as in the module).
    block_bytes: optional override of the per-input block byte target (testing).
    """
    assert prob.shape == target.shape
    b, c, *hwd = target.shape
    hw = 1
    for d in hwd:
        hw *= d

    budget, vmem_limit = _vmem_config()
    target_bytes = min(block_bytes or _TARGET_BLOCK_BYTES, budget // 6)
    target_bytes = max(target_bytes, 8 * 128 * 4)               # at least one padded tile
    itemsize = jnp.dtype(prob.dtype).itemsize

    if weight is None:
        w_c = jnp.ones((c,), jnp.float32)                       # identity weighting
    else:
        w_c = jnp.asarray(weight, jnp.float32).reshape(c)
        w_c = w_c / jnp.sum(w_c)                                # module normalizes weight

    cparams = pltpu.CompilerParams(
        dimension_semantics=("parallel", "parallel"),
        vmem_limit_bytes=vmem_limit,
    )

    if reduction in ("mean", "sum"):
        rows = b * c
        p2 = prob.reshape(rows, hw)                             # free: NCHW is contiguous
        t2 = target.reshape(rows, hw)
        w_rows = jnp.broadcast_to(w_c[None, :], (b, c)).reshape(rows, 1)

        tile_m, tile_n = _choose_tiles(rows, hw, itemsize, target_bytes)
        nr = (rows + tile_m - 1) // tile_m
        nt = (hw + tile_n - 1) // tile_n
        need_row_mask = (rows % tile_m) != 0
        need_lane_mask = (hw % tile_n) != 0

        partials = pl.pallas_call(
            functools.partial(_kl_partial_kernel, rows=rows, hw=hw,
                              tile_m=tile_m, tile_n=tile_n,
                              need_row_mask=need_row_mask,
                              need_lane_mask=need_lane_mask),
            out_shape=jax.ShapeDtypeStruct((nr, nt, 1, 1), jnp.float32),
            grid=(nr, nt),
            in_specs=[
                pl.BlockSpec((tile_m, tile_n), lambda r, n: (r, n)),   # prob
                pl.BlockSpec((tile_m, tile_n), lambda r, n: (r, n)),   # target
                pl.BlockSpec((tile_m, 1), lambda r, n: (r, 0)),        # per-row weight
            ],
            out_specs=pl.BlockSpec((1, 1, 1, 1), lambda r, n: (r, n, 0, 0)),
            compiler_params=cparams,
        )(p2, t2, w_rows)

        total = jnp.sum(partials)
        if reduction == "mean":
            return total / float(b * hw)
        return total

    if reduction == "none":
        p3 = prob.reshape(b, c, hw)
        t3 = target.reshape(b, c, hw)
        w2 = w_c.reshape(c, 1)
        tile_n = _choose_lane_tile(hw, c, itemsize, target_bytes)
        nt = (hw + tile_n - 1) // tile_n

        out = pl.pallas_call(
            _kl_none_kernel,
            out_shape=jax.ShapeDtypeStruct((b, 1, hw), jnp.float32),
            grid=(b, nt),
            in_specs=[
                pl.BlockSpec((None, c, tile_n), lambda bi, ni: (bi, 0, ni)),  # prob
                pl.BlockSpec((None, c, tile_n), lambda bi, ni: (bi, 0, ni)),  # target
                pl.BlockSpec((c, 1), lambda bi, ni: (0, 0)),                  # weight (resident)
            ],
            out_specs=pl.BlockSpec((1, 1, tile_n), lambda bi, ni: (bi, 0, ni)),
            compiler_params=cparams,
        )(p3, t3, w2)
        return out.reshape(b, *hwd)

    raise ValueError(f"unknown reduction {reduction!r}")


def _reference(prob, target, weight=None, reduction="mean"):
    kl = -target * jnp.log((prob + EPS) / (target + EPS))
    if weight is not None:
        w = jnp.asarray(weight, jnp.float32)
        w = w / w.sum()
        kl = kl * w.reshape(1, -1, *([1] * (prob.ndim - 2)))
    kl = kl.sum(axis=1)
    if reduction == "mean":
        return kl.mean()
    elif reduction == "sum":
        return kl.sum()
    return kl


if __name__ == "__main__":
    key = jax.random.PRNGKey(0)
    k1, k2, k3, k4, k5, k6 = jax.random.split(key, 6)
    B, C, H, W = 2, 4, 16, 16

    # simplex inputs along the channel axis (matches the module's assertions)
    prob = jax.nn.softmax(jax.random.normal(k1, (B, C, H, W), jnp.float32), axis=1)
    target = jax.nn.softmax(jax.random.normal(k2, (B, C, H, W), jnp.float32), axis=1)

    # default module config: reduction='mean', weight=None
    out_mean = jax.block_until_ready(kl_div(prob, target, reduction="mean"))
    ref_mean = _reference(prob, target, reduction="mean")
    assert jnp.allclose(out_mean, ref_mean, rtol=1e-5, atol=1e-6), (out_mean, ref_mean)

    # per-channel weight variant (weight normalized like the module), reduction='sum'
    weight = jnp.array([1.0, 2.0, 3.0, 4.0], jnp.float32)
    out_w = jax.block_until_ready(kl_div(prob, target, weight=weight, reduction="sum"))
    ref_w = _reference(prob, target, weight=weight, reduction="sum")
    assert jnp.allclose(out_w, ref_w, rtol=1e-5, atol=1e-6), (out_w, ref_w)

    # reduction='none' variant
    out_none = jax.block_until_ready(kl_div(prob, target, reduction="none"))
    ref_none = _reference(prob, target, reduction="none")
    assert out_none.shape == (B, H, W)
    assert jnp.allclose(out_none, ref_none, rtol=1e-5, atol=1e-6)

    # non-128-aligned spatial extent (hw = 200): handled as a full-extent lane block
    H2, W2 = 10, 20
    prob2 = jax.nn.softmax(jax.random.normal(k3, (B, C, H2, W2), jnp.float32), axis=1)
    target2 = jax.nn.softmax(jax.random.normal(k4, (B, C, H2, W2), jnp.float32), axis=1)
    out2 = jax.block_until_ready(kl_div(prob2, target2, reduction="mean"))
    ref2 = _reference(prob2, target2, reduction="mean")
    assert jnp.allclose(out2, ref2, rtol=1e-5, atol=1e-6), (out2, ref2)

    # force tiny blocks so both the row- and lane-remainder masked paths execute
    # (rows = 42 -> tile_m = 8 with a 2-row remainder; hw = 1369 -> tile_n = 128
    #  with an 89-lane remainder)
    B3, C3, H3, W3 = 7, 6, 37, 37
    prob3 = jax.nn.softmax(jax.random.normal(k5, (B3, C3, H3, W3), jnp.float32), axis=1)
    target3 = jax.nn.softmax(jax.random.normal(k6, (B3, C3, H3, W3), jnp.float32), axis=1)
    w3 = jnp.arange(1.0, C3 + 1.0, dtype=jnp.float32)
    out3 = jax.block_until_ready(
        kl_div(prob3, target3, weight=w3, reduction="sum", block_bytes=4096))
    ref3 = _reference(prob3, target3, weight=w3, reduction="sum")
    assert jnp.allclose(out3, ref3, rtol=1e-4, atol=1e-5), (out3, ref3)

    print("KERNEL_OK")
</pallas_src>

<mosaic_0001>
module attributes {stable_mosaic.version = 11 : i64} {
  func.func @_kl_partial_kernel(%arg0: i32, %arg1: i32, %arg2: memref<8x256xf32, #tpu.memory_space<vmem>>, %arg3: memref<8x256xf32, #tpu.memory_space<vmem>>, %arg4: memref<8x1xf32, #tpu.memory_space<vmem>>, %arg5: memref<1x1x1x1xf32, #tpu.memory_space<vmem>>) attributes {dimension_semantics = [#tpu.dimension_semantics<parallel>, #tpu.dimension_semantics<parallel>], iteration_bounds = array<i64: 1, 1>, scalar_prefetch = 0 : i64, scratch_operands = 0 : i64, tpu.core_type = #tpu.core_type<tc>, window_params = [{transform_indices = @transform_0, window_bounds = array<i64: 8, 256>}, {transform_indices = @transform_1, window_bounds = array<i64: 8, 256>}, {transform_indices = @transform_2, window_bounds = array<i64: 8, 1>}, {transform_indices = @transform_3, window_bounds = array<i64: 1, 1, 1, 1>}]} {
    %c0 = arith.constant 0 : index
    %c0_0 = arith.constant 0 : index
    %0 = vector.load %arg2[%c0, %c0_0] : memref<8x256xf32, #tpu.memory_space<vmem>>, vector<8x256xf32>
    %c0_1 = arith.constant 0 : index
    %c0_2 = arith.constant 0 : index
    %1 = vector.load %arg3[%c0_1, %c0_2] : memref<8x256xf32, #tpu.memory_space<vmem>>, vector<8x256xf32>
    %c0_3 = arith.constant 0 : index
    %c0_4 = arith.constant 0 : index
    %2 = vector.load %arg4[%c0_3, %c0_4] : memref<8x1xf32, #tpu.memory_space<vmem>>, vector<8x1xf32>
    %cst = arith.constant 0.000000e+00 : f32
    %3 = vector.broadcast %cst : f32 to vector<8x256xf32>
    %4 = arith.subf %3, %1 : vector<8x256xf32>
    %cst_5 = arith.constant 1.000000e-16 : f32
    %5 = vector.broadcast %cst_5 : f32 to vector<8x256xf32>
    %6 = arith.addf %0, %5 : vector<8x256xf32>
    %7 = math.log %6 : vector<8x256xf32>
    %cst_6 = arith.constant 1.000000e-16 : f32
    %8 = vector.broadcast %cst_6 : f32 to vector<8x256xf32>
    %9 = arith.addf %1, %8 : vector<8x256xf32>
    %10 = math.log %9 : vector<8x256xf32>
    %11 = arith.subf %7, %10 : vector<8x256xf32>
    %12 = arith.mulf %4, %11 : vector<8x256xf32>
    %13 = vector.broadcast %2 : vector<8x1xf32> to vector<8x256xf32>
    %14 = arith.mulf %13, %12 : vector<8x256xf32>
    %15 = vector.shape_cast %14 : vector<8x256xf32> to vector<1x8x256xf32>
    %cst_7 = arith.constant dense<0.000000e+00> : vector<1xf32>
    %16 = vector.multi_reduction <add>, %15, %cst_7 [1, 2] : vector<1x8x256xf32> to vector<1xf32>
    %17 = vector.shape_cast %16 : vector<1xf32> to vector<1x1x1xf32>
    %18 = vector.extract %17[0, 0, 0] : f32 from vector<1x1x1xf32>
    %19 = vector.broadcast %18 : f32 to vector<1x1x1x1xf32>
    %c0_8 = arith.constant 0 : index
    %c0_9 = arith.constant 0 : index
    %c0_10 = arith.constant 0 : index
    %c0_11 = arith.constant 0 : index
    %20 = vector.load %arg5[%c0_8, %c0_9, %c0_10, %c0_11] : memref<1x1x1x1xf32, #tpu.memory_space<vmem>>, vector<1x1x1x1xf32>
    tpu.vector_store %arg5[%c0_8, %c0_9, %c0_10, %c0_11], %19 {strides = array<i32>} : memref<1x1x1x1xf32, #tpu.memory_space<vmem>>, vector<1x1x1x1xf32>,
    return
  }
  func.func @transform_0(%arg0: i32, %arg1: i32) -> (i32, i32) {
    %c0_i32 = arith.constant 0 : i32
    return %arg0, %arg1 : i32, i32
  }
  func.func @transform_1(%arg0: i32, %arg1: i32) -> (i32, i32) {
    %c0_i32 = arith.constant 0 : i32
    return %arg0, %arg1 : i32, i32
  }
  func.func @transform_2(%arg0: i32, %arg1: i32) -> (i32, i32) {
    %c0_i32 = arith.constant 0 : i32
    %c0_i32_0 = arith.constant 0 : i32
    return %arg0, %c0_i32 : i32, i32
  }
  func.func @transform_3(%arg0: i32, %arg1: i32) -> (i32, i32, i32, i32) {
    %c0_i32 = arith.constant 0 : i32
    %c0_i32_0 = arith.constant 0 : i32
    %c0_i32_1 = arith.constant 0 : i32
    return %arg0, %arg1, %c0_i32, %c0_i32_0 : i32, i32, i32, i32
  }
}

</mosaic_0001>

<bundles_post_ra>
// kernel: tpu_custom_call.1
= control target key start
LH: loop header
LB: loop body
LE: loop exit
PB: predicated region body
PF: predicated region fallthrough
CT: control target
= control target key end

     0   :  { %8 = vsyncpa [#allocation3], 0  ;;  %s233_s0 = inlined_call_operand.hbm [shape: f32[8,256], index: 0, kind: input, shape index: {}]   ;;  %s234_s1 = inlined_call_operand.hbm [shape: f32[8,256], index: 1, kind: input, shape index: {}]   ;;  %s235_s2 = inlined_call_operand.vmem [shape: f32[8,1], index: 2, kind: input, shape index: {}]   ;;  %s236_s3 = inlined_call_operand.hbm [shape: f32[1,1,1,1], index: 3, kind: output, shape index: {}]  }
   0x1   :  { %9 = vsyncpa [#allocation6], 0 }
   0x2   :  { %10 = vsyncpa [#allocation4], 0  ;;  %s16_s14 = sshll.u32 %s233_s0, 4  ;;  %s197_s15 = smov [#allocation2]   ;;  %s17_s14 = int_to_ptr.hbm [resolvable:$true] %s16_s14 }
   0x3   :  { %s18_s16 = sshll.u32 %s197_s15, 4  ;;  %s27_s19 = sshll.u32 %s234_s1, 4  ;;  %s19_s16 = int_to_ptr.vmem [resolvable:$true] %s18_s16  ;;  %s28_s19 = int_to_ptr.hbm [resolvable:$true] %s27_s19 }
   0x4   :  { %21 = dma.hbm_to_vmem [thread:$0]  %s17_s14, 256, %s19_s16, [#allocation3]  }
   0x5   :  { %s198_s20 = smov [#allocation5]  }
   0x6   :  { %s29_s21 = sshll.u32 %s198_s20, 4  ;;  %s30_s21 = int_to_ptr.vmem [resolvable:$true] %s29_s21 }
   0x7   :  { %32 = dma.hbm_to_vmem [thread:$0]  %s28_s19, 256, %s30_s21, [#allocation6]  }
   0x8   :  { %191 = dma.done.wait [#allocation3], 256  }
   0x9   :  { %192 = vsyncadd [#allocation3], 4294967040 }
   0xa   :  { %193 = dma.done.wait [#allocation6], 256  }
   0xb   :  { %194 = vsyncadd [#allocation6], 4294967040  ;;  %v199_v0 = vmov 0   ;;  %v47_v1 = vld [vmem:[%s235_s2] sm:$0xff]  ;;  %v44_v3 = vld [vmem:[#allocation2 + $0x8] sm:$0xff]  ;;  %s200_s1 = smov [#allocation7]  }
   0xc   :  { %110 = vset.pattern.permute.xlu0 %v199_v0  ;;  %v43_v2 = vld [vmem:[#allocation2] sm:$0xff]  ;;  %v45_v4 = vld [vmem:[#allocation5] sm:$0xff]  ;;  %v46_v5 = vld [vmem:[#allocation5 + $0x8] sm:$0xff]  ;;  %v51_v7 = vadd.f32 1e-16, %v44_v3  ;;  %s91_s2 = sshll.u32 %s200_s1, 4  ;;  %s92_s2 = int_to_ptr.vmem [resolvable:$true] %s91_s2 }
   0xd   :  { %68 = vperm.xlu0 %110, %v47_v1   ;;  %v50_v6 = vadd.f32 1e-16, %v43_v2  ;;  %v56_v8 = vadd.f32 1e-16, %v45_v4  ;;  %v57_v9 = vadd.f32 1e-16, %v46_v5 }
   0xe   :  { %v48_v18 = vsub.f32 0.0, %v45_v4  ;;  %v49_v19 = vsub.f32 0.0, %v46_v5  ;;  %s93_s25 = sshll.u32 %s236_s3, 4  ;;  %vm84_vm0 = vcmask 0   ;;  %s94_s25 = int_to_ptr.hbm [resolvable:$true] %s93_s25 }
   0xf   :  { %111 = vlog2.f32 %v50_v6 }
  0x10   :  { %113 = vlog2.f32 %v51_v7 }
  0x11   :  { %115 = vlog2.f32 %v56_v8 }
  0x12   :  { %117 = vlog2.f32 %v57_v9 }
  0x15   :  { %v112_v10 = vpop.eup %111 }
  0x16   :  { %v114_v11 = vpop.eup %113  ;;  %v53_v14 = vmul.f32 0.6931472, %v112_v10 }
  0x17   :  { %v116_v12 = vpop.eup %115  ;;  %v55_v15 = vmul.f32 0.6931472, %v114_v11 }
  0x18   :  { %v118_v13 = vpop.eup %117  ;;  %v59_v16 = vmul.f32 0.6931472, %v116_v12 }
  0x19   :  { %v61_v17 = vmul.f32 0.6931472, %v118_v13 }
  0x1a   :  { %v62_v20 = vsub.f32 %v53_v14, %v59_v16 }
  0x1b   :  { %v63_v21 = vsub.f32 %v55_v15, %v61_v17 }
  0x1c   :  { %v64_v22 = vmul.f32 %v62_v20, %v48_v18 }
  0x1d   :  { %v65_v23 = vmul.f32 %v63_v21, %v49_v19 }
  0x7f   :  { %v69_v24 = vpop.permute.xlu0 %68 }
  0x80   :  { %v71_v25 = vmul.f32 %v69_v24, %v64_v22  ;;  %v72_v26 = vmul.f32 %v69_v24, %v65_v23 }
  0x82   :  { %v73_v27 = vadd.f32 %v72_v26, %v71_v25 }
  0x84   :  { %74 = vadd.xlane.f32.xlu0 %v73_v27 }
  0xf7   :  { %v75_v28 = vpop.xlane.xlu0 %74 }
  0xf8   :  { %v76_v29 = vrot.slane %v75_v28, 4 }
  0xfa   :  { %v77_v30 = vadd.f32 %v76_v29, %v75_v28 }
  0xfc   :  { %v78_v31 = vrot.slane %v77_v30, 2 }
  0xfe   :  { %v79_v32 = vadd.f32 %v78_v31, %v77_v30 }
 0x100   :  { %v80_v33 = vrot.slane %v79_v32, 1 }
 0x102   :  { %v81_v34 = vadd.f32 %v80_v33, %v79_v32 }
 0x104   :  { %104 = vpush %v81_v34 }
 0x135   :  { %s105_s26 = spop %104 }
 0x136   :  { %v83_v35 = vstv %s105_s26 }
 0x137   :  { %85 = vst.msk [vmem:[#allocation7] sm:$0x1] %vm84_vm0, %v83_v35 }
 0x138   :  { %96 = dma.vmem_to_hbm [thread:$0]  %s92_s2, 16, %s94_s25, [#allocation4]  }
 0x139   :  { %195 = dma.done.wait [#allocation4], 16  }
 0x13a   :  { %196 = vsyncadd [#allocation4], 4294967280 }
 0x13b   :  { %101 = vsyncpa [#allocation3], 1 }
 0x13c   :  { %102 = vsyncpa [#allocation6], 1 }
 0x13d   :  { %103 = vsyncpa [#allocation4], 1 }

</bundles_post_ra>
